<compile_context>
chip_gen: v6e
topology: v6e:2x2x1
jax: 0.10.0
libtpu: 0.0.40
codegen_flags: <defaults>
</compile_context>

<pallas_src>
import functools

import jax
import jax.numpy as jnp
import numpy as np
from jax import lax
from jax.experimental import pallas as pl
from jax.experimental.pallas import tpu as pltpu


def _layer_norm(x, gamma, beta, eps=1e-5):
    # x: (R, D) f32, gamma/beta: (1, D) f32
    mean = jnp.mean(x, axis=-1, keepdims=True)
    var = jnp.mean((x - mean) ** 2, axis=-1, keepdims=True)
    return (x - mean) * lax.rsqrt(var + eps) * gamma + beta


def _encoder_kernel(n_heads, tq,
                    x_ref, wq_ref, bq_ref, wkv_ref, bkv_ref, wout_ref, bout_ref,
                    g1_ref, be1_ref, w1_ref, bf1_ref, w2_ref, bf2_ref,
                    g2_ref, be2_ref, o_ref, kv_scr, attn_scr):
    qi = pl.program_id(1)
    S = kv_scr.shape[0]
    D = o_ref.shape[-1]
    Dh = D // n_heads
    cdt = wq_ref.dtype                      # compute dtype for MXU operands
    scale = 1.0 / float(np.sqrt(Dh))

    # --- K/V projection for the full sequence: once per batch element --------
    @pl.when(qi == 0)
    def _():
        x_full = x_ref[...].astype(cdt)                                # (S, D)
        kv = jnp.dot(x_full, wkv_ref[...],
                     preferred_element_type=jnp.float32) + bkv_ref[...]
        kv_scr[...] = kv.astype(cdt)                                   # (S, 2D)

    # --- this step's query rows (dynamic sublane slice of the resident block) -
    row0 = pl.multiple_of(qi * tq, tq)
    x_blk = x_ref[pl.ds(row0, tq), :]                                  # (tq, D) f32
    q = jnp.dot(x_blk.astype(cdt), wq_ref[...],
                preferred_element_type=jnp.float32) + bq_ref[...]
    q = (q * scale).astype(cdt)             # fold 1/sqrt(Dh) into q once (PyTorch scales q)

    kv = kv_scr[...]                                                   # (S, 2D) cdt
    k = kv[:, :D]
    v = kv[:, D:]

    # --- per-head attention; results written lane-dense into attn_scr --------
    # H is small & static; one head's (tq,S) score tile live at a time.
    # TODO(synk): for long S loop KV blocks with online softmax; for large H use a
    # head grid axis / fori_loop instead of this static Python loop.
    for h in range(n_heads):
        lo, hi = h * Dh, (h + 1) * Dh
        # contract over Dh of both operands -> no transpose of k
        s = lax.dot_general(q[:, lo:hi], k[:, lo:hi],
                            (((1,), (1,)), ((), ())),
                            preferred_element_type=jnp.float32)        # (tq, S) f32
        s = s - jnp.max(s, axis=-1, keepdims=True)
        p = jnp.exp(s)
        denom = jnp.sum(p, axis=-1, keepdims=True)
        r = pl.reciprocal(denom, approx=True)          # EUP slot
        r = r * (2.0 - denom * r)                      # one Newton-Raphson step
        p = (p * r).astype(cdt)
        attn_scr[:, lo:hi] = jnp.dot(p, v[:, lo:hi],
                                     preferred_element_type=jnp.float32)

    # --- one full-width output projection (K = D, full MXU depth) ------------
    attn_out = jnp.dot(attn_scr[...].astype(cdt), wout_ref[...],
                       preferred_element_type=jnp.float32) + bout_ref[...]

    # --- residual + LayerNorm 1 (dropout == identity at inference) -----------
    h1 = _layer_norm(x_blk + attn_out, g1_ref[...], be1_ref[...])

    # --- FFN on this row block: Linear -> ReLU -> Linear ---------------------
    ff = jnp.dot(h1.astype(cdt), w1_ref[...],
                 preferred_element_type=jnp.float32) + bf1_ref[...]
    ff = jnp.maximum(ff, 0.0)
    ff = jnp.dot(ff.astype(cdt), w2_ref[...],
                 preferred_element_type=jnp.float32) + bf2_ref[...]

    # --- residual + LayerNorm 2 -----------------------------------------------
    o_ref[...] = _layer_norm(h1 + ff, g2_ref[...], be2_ref[...])


def _pick_row_block(S):
    for t in (256, 128, 64, 32, 16, 8):
        if t <= S and S % t == 0:
            return t
    return S


def _default_vmem_limit():
    phys = 128 * 1024 * 1024
    try:
        info = pltpu.get_tpu_info()
        phys = int(getattr(info, "vmem_capacity_bytes", phys))
    except Exception:
        pass
    # ~96 MiB on v5e/v6e (128 MiB physical), 48 MiB on v7x (64 MiB physical).
    return min((3 * phys) // 4, 100 * 1024 * 1024)


def informer_encoder_layer(x, params, n_heads, compute_dtype=jnp.bfloat16):
    B, S, D = x.shape
    assert D % n_heads == 0
    d_ff = params["w1"].shape[0]
    f32 = jnp.float32
    cdt = compute_dtype

    tq = _pick_row_block(S)
    nq = S // tq

    kernel = functools.partial(_encoder_kernel, n_heads, tq)

    # Host-side weight layout plumbing: pre-transpose once so the kernel never
    # transposes anything; matmul weights cast to the compute dtype, bias/LN in f32.
    # PyTorch stores Linear weights as (out, in).
    w_in_t = jnp.asarray(params["w_in"], f32).T          # (D, 3D)
    b_in = jnp.asarray(params["b_in"], f32)              # (1, 3D)
    weights = [
        w_in_t[:, :D].astype(cdt),                       # Wq^T   (D, D)
        b_in[:, :D],                                     # bq     (1, D)
        w_in_t[:, D:].astype(cdt),                       # Wkv^T  (D, 2D)
        b_in[:, D:],                                     # bkv    (1, 2D)
        jnp.asarray(params["w_out"], f32).T.astype(cdt), # (D, D)   out_proj.weight.T
        jnp.asarray(params["b_out"], f32),               # (1, D)
        jnp.asarray(params["g1"], f32),                  # (1, D)
        jnp.asarray(params["be1"], f32),                 # (1, D)
        jnp.asarray(params["w1"], f32).T.astype(cdt),    # (D, D_FF) ff[0].weight.T
        jnp.asarray(params["bf1"], f32),                 # (1, D_FF)
        jnp.asarray(params["w2"], f32).T.astype(cdt),    # (D_FF, D) ff[2].weight.T
        jnp.asarray(params["bf2"], f32),                 # (1, D)
        jnp.asarray(params["g2"], f32),                  # (1, D)
        jnp.asarray(params["be2"], f32),                 # (1, D)
    ]

    # x: full (S, D) per batch element, constant over the row axis -> DMA'd once per b.
    in_specs = [pl.BlockSpec((None, S, D), lambda b, q: (b, 0, 0))]
    for w in weights:
        # Full-array 2D blocks, constant block index -> fetched once, stays resident.
        in_specs.append(pl.BlockSpec(w.shape, lambda b, q: (0, 0)))

    out_spec = pl.BlockSpec((None, tq, D), lambda b, q: (b, q, 0))

    # Advisory cost estimate so XLA can schedule around the custom call.
    flops_per_b = (2 * S * D * 2 * D          # K/V projection
                   + 2 * S * D * D            # Q projection
                   + 2 * S * S * D            # QK^T over all heads
                   + 2 * S * S * D            # P @ V over all heads
                   + 2 * S * D * D            # output projection
                   + 2 * S * D * d_ff * 2)    # FFN
    weight_bytes = sum(int(np.prod(w.shape)) * w.dtype.itemsize for w in weights)
    cost = pl.CostEstimate(
        flops=B * flops_per_b,
        transcendentals=B * (n_heads * S * S + 2 * S),
        bytes_accessed=2 * B * S * D * 4 + weight_bytes,
    )

    return pl.pallas_call(
        kernel,
        out_shape=jax.ShapeDtypeStruct((B, S, D), jnp.float32),
        grid_spec=pltpu.PrefetchScalarGridSpec(
            num_scalar_prefetch=0,
            grid=(B, nq),
            in_specs=in_specs,
            out_specs=out_spec,
            scratch_shapes=[
                pltpu.VMEM((S, 2 * D), cdt),        # K/V for the current batch element
                pltpu.VMEM((tq, D), jnp.float32),   # lane-dense per-head attention output
            ],
        ),
        compiler_params=pltpu.CompilerParams(
            # Row axis is "arbitrary": K/V scratch is filled at qi==0 and reused.
            dimension_semantics=("parallel", "arbitrary"),
            vmem_limit_bytes=_default_vmem_limit(),
        ),
        cost_estimate=cost,
    )(x, *weights)


def _reference(x, p, n_heads):
    # Pure-JAX reference reproducing PyTorch nn.MultiheadAttention (batch_first) + FFN + LayerNorms.
    B, S, D = x.shape
    Dh = D // n_heads
    qkv = x @ p["w_in"].T + p["b_in"][0]
    q, k, v = qkv[..., :D], qkv[..., D:2 * D], qkv[..., 2 * D:]
    q = q.reshape(B, S, n_heads, Dh).transpose(0, 2, 1, 3)
    k = k.reshape(B, S, n_heads, Dh).transpose(0, 2, 1, 3)
    v = v.reshape(B, S, n_heads, Dh).transpose(0, 2, 1, 3)
    s = (q @ k.transpose(0, 1, 3, 2)) / np.sqrt(Dh)
    a = jax.nn.softmax(s, axis=-1)
    attn = (a @ v).transpose(0, 2, 1, 3).reshape(B, S, D)
    attn = attn @ p["w_out"].T + p["b_out"][0]

    def ln(z, g, b, eps=1e-5):
        m = jnp.mean(z, axis=-1, keepdims=True)
        var = jnp.mean((z - m) ** 2, axis=-1, keepdims=True)
        return (z - m) * jax.lax.rsqrt(var + eps) * g + b

    h1 = ln(x + attn, p["g1"][0], p["be1"][0])
    ff = jnp.maximum(h1 @ p["w1"].T + p["bf1"][0], 0.0)
    ff = ff @ p["w2"].T + p["bf2"][0]
    return ln(h1 + ff, p["g2"][0], p["be2"][0])


if __name__ == "__main__":
    B, S, D, H, D_FF = 2, 8, 32, 4, 64

    key = jax.random.PRNGKey(0)
    ks = jax.random.split(key, 9)
    f32 = jnp.float32

    params = {
        "w_in":  (0.1 * jax.random.normal(ks[0], (3 * D, D))).astype(f32),   # in_proj_weight
        "b_in":  (0.1 * jax.random.normal(ks[1], (1, 3 * D))).astype(f32),   # in_proj_bias
        "w_out": (0.1 * jax.random.normal(ks[2], (D, D))).astype(f32),       # out_proj.weight
        "b_out": (0.1 * jax.random.normal(ks[3], (1, D))).astype(f32),       # out_proj.bias
        "g1":    jnp.ones((1, D), f32),                                      # norm1.weight
        "be1":   jnp.zeros((1, D), f32),                                     # norm1.bias
        "w1":    (0.1 * jax.random.normal(ks[4], (D_FF, D))).astype(f32),    # ff[0].weight
        "bf1":   (0.1 * jax.random.normal(ks[5], (1, D_FF))).astype(f32),    # ff[0].bias
        "w2":    (0.1 * jax.random.normal(ks[6], (D, D_FF))).astype(f32),    # ff[2].weight
        "bf2":   (0.1 * jax.random.normal(ks[7], (1, D))).astype(f32),       # ff[2].bias
        "g2":    jnp.ones((1, D), f32),                                      # norm2.weight
        "be2":   jnp.zeros((1, D), f32),                                     # norm2.bias
    }

    x = jax.random.normal(ks[8], (B, S, D)).astype(f32)

    ref = _reference(x, params, H)

    # Exact-semantics check: f32 compute path, tight tolerance.
    out_f32 = jax.block_until_ready(
        informer_encoder_layer(x, params, H, compute_dtype=jnp.float32))
    np.testing.assert_allclose(np.asarray(out_f32), np.asarray(ref), atol=1e-4, rtol=1e-4)

    # Fast path: bf16 MXU operands (f32 accumulation / softmax / LayerNorm stats).
    out_bf16 = jax.block_until_ready(
        informer_encoder_layer(x, params, H, compute_dtype=jnp.bfloat16))
    np.testing.assert_allclose(np.asarray(out_bf16), np.asarray(ref), atol=3e-2, rtol=3e-2)

    print("KERNEL_OK")
</pallas_src>

<mosaic_0001>
module attributes {stable_mosaic.version = 11 : i64} {
  func.func @_encoder_kernel(%arg0: i32, %arg1: i32, %arg2: memref<1x8x32xf32, #tpu.memory_space<vmem>>, %arg3: memref<32x32xf32, #tpu.memory_space<vmem>>, %arg4: memref<1x32xf32, #tpu.memory_space<vmem>>, %arg5: memref<32x64xf32, #tpu.memory_space<vmem>>, %arg6: memref<1x64xf32, #tpu.memory_space<vmem>>, %arg7: memref<32x32xf32, #tpu.memory_space<vmem>>, %arg8: memref<1x32xf32, #tpu.memory_space<vmem>>, %arg9: memref<1x32xf32, #tpu.memory_space<vmem>>, %arg10: memref<1x32xf32, #tpu.memory_space<vmem>>, %arg11: memref<32x64xf32, #tpu.memory_space<vmem>>, %arg12: memref<1x64xf32, #tpu.memory_space<vmem>>, %arg13: memref<64x32xf32, #tpu.memory_space<vmem>>, %arg14: memref<1x32xf32, #tpu.memory_space<vmem>>, %arg15: memref<1x32xf32, #tpu.memory_space<vmem>>, %arg16: memref<1x32xf32, #tpu.memory_space<vmem>>, %arg17: memref<1x8x32xf32, #tpu.memory_space<vmem>>, %arg18: memref<8x64xf32, #tpu.memory_space<vmem>>, %arg19: memref<8x32xf32, #tpu.memory_space<vmem>>) attributes {dimension_semantics = [#tpu.dimension_semantics<parallel>, #tpu.dimension_semantics<arbitrary>], iteration_bounds = array<i64: 2, 1>, scalar_prefetch = 0 : i64, scratch_operands = 2 : i64, tpu.core_type = #tpu.core_type<tc>, window_params = [{transform_indices = @transform_0, window_bounds = array<i64: 1, 8, 32>}, {pipeline_mode = #tpu.pipeline_mode<synchronous>, transform_indices = @transform_1, window_bounds = array<i64: 32, 32>}, {pipeline_mode = #tpu.pipeline_mode<synchronous>, transform_indices = @transform_2, window_bounds = array<i64: 1, 32>}, {pipeline_mode = #tpu.pipeline_mode<synchronous>, transform_indices = @transform_3, window_bounds = array<i64: 32, 64>}, {pipeline_mode = #tpu.pipeline_mode<synchronous>, transform_indices = @transform_4, window_bounds = array<i64: 1, 64>}, {pipeline_mode = #tpu.pipeline_mode<synchronous>, transform_indices = @transform_5, window_bounds = array<i64: 32, 32>}, {pipeline_mode = #tpu.pipeline_mode<synchronous>, transform_indices = @transform_6, window_bounds = array<i64: 1, 32>}, {pipeline_mode = #tpu.pipeline_mode<synchronous>, transform_indices = @transform_7, window_bounds = array<i64: 1, 32>}, {pipeline_mode = #tpu.pipeline_mode<synchronous>, transform_indices = @transform_8, window_bounds = array<i64: 1, 32>}, {pipeline_mode = #tpu.pipeline_mode<synchronous>, transform_indices = @transform_9, window_bounds = array<i64: 32, 64>}, {pipeline_mode = #tpu.pipeline_mode<synchronous>, transform_indices = @transform_10, window_bounds = array<i64: 1, 64>}, {pipeline_mode = #tpu.pipeline_mode<synchronous>, transform_indices = @transform_11, window_bounds = array<i64: 64, 32>}, {pipeline_mode = #tpu.pipeline_mode<synchronous>, transform_indices = @transform_12, window_bounds = array<i64: 1, 32>}, {pipeline_mode = #tpu.pipeline_mode<synchronous>, transform_indices = @transform_13, window_bounds = array<i64: 1, 32>}, {pipeline_mode = #tpu.pipeline_mode<synchronous>, transform_indices = @transform_14, window_bounds = array<i64: 1, 32>}, {transform_indices = @transform_15, window_bounds = array<i64: 1, 8, 32>}]} {
    %c0_i32 = arith.constant 0 : i32
    %0 = arith.cmpi eq, %arg1, %c0_i32 : i32
    %1 = arith.extui %0 : i1 to i32
    %c0_i32_0 = arith.constant 0 : i32
    %2 = arith.cmpi ne, %1, %c0_i32_0 : i32
    scf.if %2 {
      %c0_73 = arith.constant 0 : index
      %c0_74 = arith.constant 0 : index
      %c0_75 = arith.constant 0 : index
      %169 = vector.load %arg2[%c0_73, %c0_74, %c0_75] : memref<1x8x32xf32, #tpu.memory_space<vmem>>, vector<1x8x32xf32>
      %170 = vector.shape_cast %169 : vector<1x8x32xf32> to vector<8x32xf32>
      %c0_76 = arith.constant 0 : index
      %c0_77 = arith.constant 0 : index
      %171 = vector.load %arg5[%c0_76, %c0_77] : memref<32x64xf32, #tpu.memory_space<vmem>>, vector<32x64xf32>
      %cst_78 = arith.constant dense<0.000000e+00> : vector<8x64xf32>
      %172 = tpu.matmul %170, %171, %cst_78 {dimension_numbers = #tpu.dot_dimension_numbers<[1], [0], [0], [1], [0, 0, 1, 1], [], []>} : vector<8x32xf32>, vector<32x64xf32>, vector<8x64xf32> -> vector<8x64xf32>
      %c0_79 = arith.constant 0 : index
      %c0_80 = arith.constant 0 : index
      %173 = vector.load %arg6[%c0_79, %c0_80] : memref<1x64xf32, #tpu.memory_space<vmem>>, vector<1x64xf32>
      %174 = vector.broadcast %173 : vector<1x64xf32> to vector<8x64xf32>
      %175 = arith.addf %172, %174 : vector<8x64xf32>
      %c0_81 = arith.constant 0 : index
      %c0_82 = arith.constant 0 : index
      %176 = vector.load %arg18[%c0_81, %c0_82] : memref<8x64xf32, #tpu.memory_space<vmem>>, vector<8x64xf32>
      tpu.vector_store %arg18[%c0_81, %c0_82], %175 {strides = array<i32>} : memref<8x64xf32, #tpu.memory_space<vmem>>, vector<8x64xf32>,
    } else {
    }
    %c8_i32 = arith.constant 8 : i32
    %3 = arith.muli %arg1, %c8_i32 : i32
    %4 = tpu.assume_multiple %3, 8 : i32
    %c0 = arith.constant 0 : index
    %5 = arith.index_cast %4 : i32 to index
    %c0_1 = arith.constant 0 : index
    %6 = vector.load %arg2[%c0, %5, %c0_1] : memref<1x8x32xf32, #tpu.memory_space<vmem>>, vector<1x8x32xf32>
    %7 = vector.shape_cast %6 : vector<1x8x32xf32> to vector<8x32xf32>
    %c0_2 = arith.constant 0 : index
    %c0_3 = arith.constant 0 : index
    %8 = vector.load %arg3[%c0_2, %c0_3] : memref<32x32xf32, #tpu.memory_space<vmem>>, vector<32x32xf32>
    %cst = arith.constant dense<0.000000e+00> : vector<8x32xf32>
    %9 = tpu.matmul %7, %8, %cst {dimension_numbers = #tpu.dot_dimension_numbers<[1], [0], [0], [1], [0, 0, 1, 1], [], []>} : vector<8x32xf32>, vector<32x32xf32>, vector<8x32xf32> -> vector<8x32xf32>
    %c0_4 = arith.constant 0 : index
    %c0_5 = arith.constant 0 : index
    %10 = vector.load %arg4[%c0_4, %c0_5] : memref<1x32xf32, #tpu.memory_space<vmem>>, vector<1x32xf32>
    %11 = vector.broadcast %10 : vector<1x32xf32> to vector<8x32xf32>
    %12 = arith.addf %9, %11 : vector<8x32xf32>
    %cst_6 = arith.constant 0.353553385 : f32
    %13 = vector.broadcast %cst_6 : f32 to vector<8x32xf32>
    %14 = arith.mulf %12, %13 : vector<8x32xf32>
    %c0_7 = arith.constant 0 : index
    %c0_8 = arith.constant 0 : index
    %15 = vector.load %arg18[%c0_7, %c0_8] : memref<8x64xf32, #tpu.memory_space<vmem>>, vector<8x64xf32>
    %16 = vector.extract_strided_slice %15 {offsets = [0, 0], sizes = [8, 32], strides = [1, 1]} : vector<8x64xf32> to vector<8x32xf32>
    %17 = vector.extract_strided_slice %15 {offsets = [0, 32], sizes = [8, 32], strides = [1, 1]} : vector<8x64xf32> to vector<8x32xf32>
    %18 = vector.extract_strided_slice %14 {offsets = [0, 0], sizes = [8, 8], strides = [1, 1]} : vector<8x32xf32> to vector<8x8xf32>
    %19 = vector.extract_strided_slice %16 {offsets = [0, 0], sizes = [8, 8], strides = [1, 1]} : vector<8x32xf32> to vector<8x8xf32>
    %cst_9 = arith.constant dense<0.000000e+00> : vector<8x8xf32>
    %20 = tpu.matmul %18, %19, %cst_9 {dimension_numbers = #tpu.dot_dimension_numbers<[1], [1], [0], [0], [0, 0, 1, 0], [], []>} : vector<8x8xf32>, vector<8x8xf32>, vector<8x8xf32> -> vector<8x8xf32>
    %cst_10 = arith.constant dense<0xFF800000> : vector<8xf32>
    %21 = vector.multi_reduction <maximumf>, %20, %cst_10 [1] : vector<8x8xf32> to vector<8xf32>
    %22 = vector.shape_cast %21 : vector<8xf32> to vector<8x1xf32>
    %23 = vector.broadcast %22 : vector<8x1xf32> to vector<8x8xf32>
    %24 = arith.subf %20, %23 : vector<8x8xf32>
    %25 = math.exp %24 : vector<8x8xf32>
    %cst_11 = arith.constant dense<0.000000e+00> : vector<8xf32>
    %26 = vector.multi_reduction <add>, %25, %cst_11 [1] : vector<8x8xf32> to vector<8xf32>
    %27 = vector.shape_cast %26 : vector<8xf32> to vector<8x1xf32>
    %28 = tpu.reciprocal %27 {approx = true} : vector<8x1xf32> -> vector<8x1xf32>
    %29 = arith.mulf %27, %28 : vector<8x1xf32>
    %cst_12 = arith.constant 2.000000e+00 : f32
    %30 = vector.broadcast %cst_12 : f32 to vector<8x1xf32>
    %31 = arith.subf %30, %29 : vector<8x1xf32>
    %32 = arith.mulf %28, %31 : vector<8x1xf32>
    %33 = vector.broadcast %32 : vector<8x1xf32> to vector<8x8xf32>
    %34 = arith.mulf %25, %33 : vector<8x8xf32>
    %35 = vector.extract_strided_slice %17 {offsets = [0, 0], sizes = [8, 8], strides = [1, 1]} : vector<8x32xf32> to vector<8x8xf32>
    %cst_13 = arith.constant dense<0.000000e+00> : vector<8x8xf32>
    %36 = tpu.matmul %34, %35, %cst_13 {dimension_numbers = #tpu.dot_dimension_numbers<[1], [0], [0], [1], [0, 0, 1, 1], [], []>} : vector<8x8xf32>, vector<8x8xf32>, vector<8x8xf32> -> vector<8x8xf32>
    %c0_14 = arith.constant 0 : index
    %c0_15 = arith.constant 0 : index
    %37 = vector.load %arg19[%c0_14, %c0_15] : memref<8x32xf32, #tpu.memory_space<vmem>>, vector<8x8xf32>
    tpu.vector_store %arg19[%c0_14, %c0_15], %36 {strides = array<i32>} : memref<8x32xf32, #tpu.memory_space<vmem>>, vector<8x8xf32>,
    %38 = vector.extract_strided_slice %14 {offsets = [0, 8], sizes = [8, 8], strides = [1, 1]} : vector<8x32xf32> to vector<8x8xf32>
    %39 = vector.extract_strided_slice %16 {offsets = [0, 8], sizes = [8, 8], strides = [1, 1]} : vector<8x32xf32> to vector<8x8xf32>
    %cst_16 = arith.constant dense<0.000000e+00> : vector<8x8xf32>
    %40 = tpu.matmul %38, %39, %cst_16 {dimension_numbers = #tpu.dot_dimension_numbers<[1], [1], [0], [0], [0, 0, 1, 0], [], []>} : vector<8x8xf32>, vector<8x8xf32>, vector<8x8xf32> -> vector<8x8xf32>
    %cst_17 = arith.constant dense<0xFF800000> : vector<8xf32>
    %41 = vector.multi_reduction <maximumf>, %40, %cst_17 [1] : vector<8x8xf32> to vector<8xf32>
    %42 = vector.shape_cast %41 : vector<8xf32> to vector<8x1xf32>
    %43 = vector.broadcast %42 : vector<8x1xf32> to vector<8x8xf32>
    %44 = arith.subf %40, %43 : vector<8x8xf32>
    %45 = math.exp %44 : vector<8x8xf32>
    %cst_18 = arith.constant dense<0.000000e+00> : vector<8xf32>
    %46 = vector.multi_reduction <add>, %45, %cst_18 [1] : vector<8x8xf32> to vector<8xf32>
    %47 = vector.shape_cast %46 : vector<8xf32> to vector<8x1xf32>
    %48 = tpu.reciprocal %47 {approx = true} : vector<8x1xf32> -> vector<8x1xf32>
    %49 = arith.mulf %47, %48 : vector<8x1xf32>
    %cst_19 = arith.constant 2.000000e+00 : f32
    %50 = vector.broadcast %cst_19 : f32 to vector<8x1xf32>
    %51 = arith.subf %50, %49 : vector<8x1xf32>
    %52 = arith.mulf %48, %51 : vector<8x1xf32>
    %53 = vector.broadcast %52 : vector<8x1xf32> to vector<8x8xf32>
    %54 = arith.mulf %45, %53 : vector<8x8xf32>
    %55 = vector.extract_strided_slice %17 {offsets = [0, 8], sizes = [8, 8], strides = [1, 1]} : vector<8x32xf32> to vector<8x8xf32>
    %cst_20 = arith.constant dense<0.000000e+00> : vector<8x8xf32>
    %56 = tpu.matmul %54, %55, %cst_20 {dimension_numbers = #tpu.dot_dimension_numbers<[1], [0], [0], [1], [0, 0, 1, 1], [], []>} : vector<8x8xf32>, vector<8x8xf32>, vector<8x8xf32> -> vector<8x8xf32>
    %c0_21 = arith.constant 0 : index
    %c8 = arith.constant 8 : index
    %57 = vector.load %arg19[%c0_21, %c8] : memref<8x32xf32, #tpu.memory_space<vmem>>, vector<8x8xf32>
    tpu.vector_store %arg19[%c0_21, %c8], %56 {strides = array<i32>} : memref<8x32xf32, #tpu.memory_space<vmem>>, vector<8x8xf32>,
    %58 = vector.extract_strided_slice %14 {offsets = [0, 16], sizes = [8, 8], strides = [1, 1]} : vector<8x32xf32> to vector<8x8xf32>
    %59 = vector.extract_strided_slice %16 {offsets = [0, 16], sizes = [8, 8], strides = [1, 1]} : vector<8x32xf32> to vector<8x8xf32>
    %cst_22 = arith.constant dense<0.000000e+00> : vector<8x8xf32>
    %60 = tpu.matmul %58, %59, %cst_22 {dimension_numbers = #tpu.dot_dimension_numbers<[1], [1], [0], [0], [0, 0, 1, 0], [], []>} : vector<8x8xf32>, vector<8x8xf32>, vector<8x8xf32> -> vector<8x8xf32>
    %cst_23 = arith.constant dense<0xFF800000> : vector<8xf32>
    %61 = vector.multi_reduction <maximumf>, %60, %cst_23 [1] : vector<8x8xf32> to vector<8xf32>
    %62 = vector.shape_cast %61 : vector<8xf32> to vector<8x1xf32>
    %63 = vector.broadcast %62 : vector<8x1xf32> to vector<8x8xf32>
    %64 = arith.subf %60, %63 : vector<8x8xf32>
    %65 = math.exp %64 : vector<8x8xf32>
    %cst_24 = arith.constant dense<0.000000e+00> : vector<8xf32>
    %66 = vector.multi_reduction <add>, %65, %cst_24 [1] : vector<8x8xf32> to vector<8xf32>
    %67 = vector.shape_cast %66 : vector<8xf32> to vector<8x1xf32>
    %68 = tpu.reciprocal %67 {approx = true} : vector<8x1xf32> -> vector<8x1xf32>
    %69 = arith.mulf %67, %68 : vector<8x1xf32>
    %cst_25 = arith.constant 2.000000e+00 : f32
    %70 = vector.broadcast %cst_25 : f32 to vector<8x1xf32>
    %71 = arith.subf %70, %69 : vector<8x1xf32>
    %72 = arith.mulf %68, %71 : vector<8x1xf32>
    %73 = vector.broadcast %72 : vector<8x1xf32> to vector<8x8xf32>
    %74 = arith.mulf %65, %73 : vector<8x8xf32>
    %75 = vector.extract_strided_slice %17 {offsets = [0, 16], sizes = [8, 8], strides = [1, 1]} : vector<8x32xf32> to vector<8x8xf32>
    %cst_26 = arith.constant dense<0.000000e+00> : vector<8x8xf32>
    %76 = tpu.matmul %74, %75, %cst_26 {dimension_numbers = #tpu.dot_dimension_numbers<[1], [0], [0], [1], [0, 0, 1, 1], [], []>} : vector<8x8xf32>, vector<8x8xf32>, vector<8x8xf32> -> vector<8x8xf32>
    %c0_27 = arith.constant 0 : index
    %c16 = arith.constant 16 : index
    %77 = vector.load %arg19[%c0_27, %c16] : memref<8x32xf32, #tpu.memory_space<vmem>>, vector<8x8xf32>
    tpu.vector_store %arg19[%c0_27, %c16], %76 {strides = array<i32>} : memref<8x32xf32, #tpu.memory_space<vmem>>, vector<8x8xf32>,
    %78 = vector.extract_strided_slice %14 {offsets = [0, 24], sizes = [8, 8], strides = [1, 1]} : vector<8x32xf32> to vector<8x8xf32>
    %79 = vector.extract_strided_slice %16 {offsets = [0, 24], sizes = [8, 8], strides = [1, 1]} : vector<8x32xf32> to vector<8x8xf32>
    %cst_28 = arith.constant dense<0.000000e+00> : vector<8x8xf32>
    %80 = tpu.matmul %78, %79, %cst_28 {dimension_numbers = #tpu.dot_dimension_numbers<[1], [1], [0], [0], [0, 0, 1, 0], [], []>} : vector<8x8xf32>, vector<8x8xf32>, vector<8x8xf32> -> vector<8x8xf32>
    %cst_29 = arith.constant dense<0xFF800000> : vector<8xf32>
    %81 = vector.multi_reduction <maximumf>, %80, %cst_29 [1] : vector<8x8xf32> to vector<8xf32>
    %82 = vector.shape_cast %81 : vector<8xf32> to vector<8x1xf32>
    %83 = vector.broadcast %82 : vector<8x1xf32> to vector<8x8xf32>
    %84 = arith.subf %80, %83 : vector<8x8xf32>
    %85 = math.exp %84 : vector<8x8xf32>
    %cst_30 = arith.constant dense<0.000000e+00> : vector<8xf32>
    %86 = vector.multi_reduction <add>, %85, %cst_30 [1] : vector<8x8xf32> to vector<8xf32>
    %87 = vector.shape_cast %86 : vector<8xf32> to vector<8x1xf32>
    %88 = tpu.reciprocal %87 {approx = true} : vector<8x1xf32> -> vector<8x1xf32>
    %89 = arith.mulf %87, %88 : vector<8x1xf32>
    %cst_31 = arith.constant 2.000000e+00 : f32
    %90 = vector.broadcast %cst_31 : f32 to vector<8x1xf32>
    %91 = arith.subf %90, %89 : vector<8x1xf32>
    %92 = arith.mulf %88, %91 : vector<8x1xf32>
    %93 = vector.broadcast %92 : vector<8x1xf32> to vector<8x8xf32>
    %94 = arith.mulf %85, %93 : vector<8x8xf32>
    %95 = vector.extract_strided_slice %17 {offsets = [0, 24], sizes = [8, 8], strides = [1, 1]} : vector<8x32xf32> to vector<8x8xf32>
    %cst_32 = arith.constant dense<0.000000e+00> : vector<8x8xf32>
    %96 = tpu.matmul %94, %95, %cst_32 {dimension_numbers = #tpu.dot_dimension_numbers<[1], [0], [0], [1], [0, 0, 1, 1], [], []>} : vector<8x8xf32>, vector<8x8xf32>, vector<8x8xf32> -> vector<8x8xf32>
    %c0_33 = arith.constant 0 : index
    %c24 = arith.constant 24 : index
    %97 = vector.load %arg19[%c0_33, %c24] : memref<8x32xf32, #tpu.memory_space<vmem>>, vector<8x8xf32>
    tpu.vector_store %arg19[%c0_33, %c24], %96 {strides = array<i32>} : memref<8x32xf32, #tpu.memory_space<vmem>>, vector<8x8xf32>,
    %c0_34 = arith.constant 0 : index
    %c0_35 = arith.constant 0 : index
    %98 = vector.load %arg19[%c0_34, %c0_35] : memref<8x32xf32, #tpu.memory_space<vmem>>, vector<8x32xf32>
    %c0_36 = arith.constant 0 : index
    %c0_37 = arith.constant 0 : index
    %99 = vector.load %arg7[%c0_36, %c0_37] : memref<32x32xf32, #tpu.memory_space<vmem>>, vector<32x32xf32>
    %cst_38 = arith.constant dense<0.000000e+00> : vector<8x32xf32>
    %100 = tpu.matmul %98, %99, %cst_38 {dimension_numbers = #tpu.dot_dimension_numbers<[1], [0], [0], [1], [0, 0, 1, 1], [], []>} : vector<8x32xf32>, vector<32x32xf32>, vector<8x32xf32> -> vector<8x32xf32>
    %c0_39 = arith.constant 0 : index
    %c0_40 = arith.constant 0 : index
    %101 = vector.load %arg8[%c0_39, %c0_40] : memref<1x32xf32, #tpu.memory_space<vmem>>, vector<1x32xf32>
    %102 = vector.broadcast %101 : vector<1x32xf32> to vector<8x32xf32>
    %103 = arith.addf %100, %102 : vector<8x32xf32>
    %104 = arith.addf %7, %103 : vector<8x32xf32>
    %c0_41 = arith.constant 0 : index
    %c0_42 = arith.constant 0 : index
    %105 = vector.load %arg9[%c0_41, %c0_42] : memref<1x32xf32, #tpu.memory_space<vmem>>, vector<1x32xf32>
    %c0_43 = arith.constant 0 : index
    %c0_44 = arith.constant 0 : index
    %106 = vector.load %arg10[%c0_43, %c0_44] : memref<1x32xf32, #tpu.memory_space<vmem>>, vector<1x32xf32>
    %cst_45 = arith.constant dense<0.000000e+00> : vector<8xf32>
    %107 = vector.multi_reduction <add>, %104, %cst_45 [1] : vector<8x32xf32> to vector<8xf32>
    %108 = vector.shape_cast %107 : vector<8xf32> to vector<8x1xf32>
    %cst_46 = arith.constant 3.200000e+01 : f32
    %109 = vector.broadcast %cst_46 : f32 to vector<8x1xf32>
    %110 = arith.divf %108, %109 : vector<8x1xf32>
    %111 = vector.broadcast %110 : vector<8x1xf32> to vector<8x32xf32>
    %112 = arith.subf %104, %111 : vector<8x32xf32>
    %113 = arith.mulf %112, %112 : vector<8x32xf32>
    %cst_47 = arith.constant dense<0.000000e+00> : vector<8xf32>
    %114 = vector.multi_reduction <add>, %113, %cst_47 [1] : vector<8x32xf32> to vector<8xf32>
    %115 = vector.shape_cast %114 : vector<8xf32> to vector<8x1xf32>
    %cst_48 = arith.constant 3.200000e+01 : f32
    %116 = vector.broadcast %cst_48 : f32 to vector<8x1xf32>
    %117 = arith.divf %115, %116 : vector<8x1xf32>
    %118 = vector.broadcast %110 : vector<8x1xf32> to vector<8x32xf32>
    %119 = arith.subf %104, %118 : vector<8x32xf32>
    %cst_49 = arith.constant 9.99999974E-6 : f32
    %120 = vector.broadcast %cst_49 : f32 to vector<8x1xf32>
    %121 = arith.addf %117, %120 : vector<8x1xf32>
    %122 = math.rsqrt %121 : vector<8x1xf32>
    %123 = vector.broadcast %122 : vector<8x1xf32> to vector<8x32xf32>
    %124 = arith.mulf %119, %123 : vector<8x32xf32>
    %125 = vector.broadcast %105 : vector<1x32xf32> to vector<8x32xf32>
    %126 = arith.mulf %124, %125 : vector<8x32xf32>
    %127 = vector.broadcast %106 : vector<1x32xf32> to vector<8x32xf32>
    %128 = arith.addf %126, %127 : vector<8x32xf32>
    %c0_50 = arith.constant 0 : index
    %c0_51 = arith.constant 0 : index
    %129 = vector.load %arg11[%c0_50, %c0_51] : memref<32x64xf32, #tpu.memory_space<vmem>>, vector<32x64xf32>
    %cst_52 = arith.constant dense<0.000000e+00> : vector<8x64xf32>
    %130 = tpu.matmul %128, %129, %cst_52 {dimension_numbers = #tpu.dot_dimension_numbers<[1], [0], [0], [1], [0, 0, 1, 1], [], []>} : vector<8x32xf32>, vector<32x64xf32>, vector<8x64xf32> -> vector<8x64xf32>
    %c0_53 = arith.constant 0 : index
    %c0_54 = arith.constant 0 : index
    %131 = vector.load %arg12[%c0_53, %c0_54] : memref<1x64xf32, #tpu.memory_space<vmem>>, vector<1x64xf32>
    %132 = vector.broadcast %131 : vector<1x64xf32> to vector<8x64xf32>
    %133 = arith.addf %130, %132 : vector<8x64xf32>
    %cst_55 = arith.constant 0.000000e+00 : f32
    %134 = vector.broadcast %cst_55 : f32 to vector<8x64xf32>
    %135 = arith.maximumf %133, %134 : vector<8x64xf32>
    %c0_56 = arith.constant 0 : index
    %c0_57 = arith.constant 0 : index
    %136 = vector.load %arg13[%c0_56, %c0_57] : memref<64x32xf32, #tpu.memory_space<vmem>>, vector<64x32xf32>
    %cst_58 = arith.constant dense<0.000000e+00> : vector<8x32xf32>
    %137 = tpu.matmul %135, %136, %cst_58 {dimension_numbers = #tpu.dot_dimension_numbers<[1], [0], [0], [1], [0, 0, 1, 1], [], []>} : vector<8x64xf32>, vector<64x32xf32>, vector<8x32xf32> -> vector<8x32xf32>
    %c0_59 = arith.constant 0 : index
    %c0_60 = arith.constant 0 : index
    %138 = vector.load %arg14[%c0_59, %c0_60] : memref<1x32xf32, #tpu.memory_space<vmem>>, vector<1x32xf32>
    %139 = vector.broadcast %138 : vector<1x32xf32> to vector<8x32xf32>
    %140 = arith.addf %137, %139 : vector<8x32xf32>
    %141 = arith.addf %128, %140 : vector<8x32xf32>
    %c0_61 = arith.constant 0 : index
    %c0_62 = arith.constant 0 : index
    %142 = vector.load %arg15[%c0_61, %c0_62] : memref<1x32xf32, #tpu.memory_space<vmem>>, vector<1x32xf32>
    %c0_63 = arith.constant 0 : index
    %c0_64 = arith.constant 0 : index
    %143 = vector.load %arg16[%c0_63, %c0_64] : memref<1x32xf32, #tpu.memory_space<vmem>>, vector<1x32xf32>
    %cst_65 = arith.constant dense<0.000000e+00> : vector<8xf32>
    %144 = vector.multi_reduction <add>, %141, %cst_65 [1] : vector<8x32xf32> to vector<8xf32>
    %145 = vector.shape_cast %144 : vector<8xf32> to vector<8x1xf32>
    %cst_66 = arith.constant 3.200000e+01 : f32
    %146 = vector.broadcast %cst_66 : f32 to vector<8x1xf32>
    %147 = arith.divf %145, %146 : vector<8x1xf32>
    %148 = vector.broadcast %147 : vector<8x1xf32> to vector<8x32xf32>
    %149 = arith.subf %141, %148 : vector<8x32xf32>
    %150 = arith.mulf %149, %149 : vector<8x32xf32>
    %cst_67 = arith.constant dense<0.000000e+00> : vector<8xf32>
    %151 = vector.multi_reduction <add>, %150, %cst_67 [1] : vector<8x32xf32> to vector<8xf32>
    %152 = vector.shape_cast %151 : vector<8xf32> to vector<8x1xf32>
    %cst_68 = arith.constant 3.200000e+01 : f32
    %153 = vector.broadcast %cst_68 : f32 to vector<8x1xf32>
    %154 = arith.divf %152, %153 : vector<8x1xf32>
    %155 = vector.broadcast %147 : vector<8x1xf32> to vector<8x32xf32>
    %156 = arith.subf %141, %155 : vector<8x32xf32>
    %cst_69 = arith.constant 9.99999974E-6 : f32
    %157 = vector.broadcast %cst_69 : f32 to vector<8x1xf32>
    %158 = arith.addf %154, %157 : vector<8x1xf32>
    %159 = math.rsqrt %158 : vector<8x1xf32>
    %160 = vector.broadcast %159 : vector<8x1xf32> to vector<8x32xf32>
    %161 = arith.mulf %156, %160 : vector<8x32xf32>
    %162 = vector.broadcast %142 : vector<1x32xf32> to vector<8x32xf32>
    %163 = arith.mulf %161, %162 : vector<8x32xf32>
    %164 = vector.broadcast %143 : vector<1x32xf32> to vector<8x32xf32>
    %165 = arith.addf %163, %164 : vector<8x32xf32>
    %c0_70 = arith.constant 0 : index
    %c0_71 = arith.constant 0 : index
    %c0_72 = arith.constant 0 : index
    %166 = vector.load %arg17[%c0_70, %c0_71, %c0_72] : memref<1x8x32xf32, #tpu.memory_space<vmem>>, vector<1x8x32xf32>
    %167 = vector.shape_cast %166 : vector<1x8x32xf32> to vector<8x32xf32>
    %168 = vector.shape_cast %165 : vector<8x32xf32> to vector<1x8x32xf32>
    tpu.vector_store %arg17[%c0_70, %c0_71, %c0_72], %168 {strides = array<i32>} : memref<1x8x32xf32, #tpu.memory_space<vmem>>, vector<1x8x32xf32>,
    return
  }
  func.func @transform_0(%arg0: i32, %arg1: i32) -> (i32, i32, i32) {
    %c0_i32 = arith.constant 0 : i32
    %c0_i32_0 = arith.constant 0 : i32
    %c0_i32_1 = arith.constant 0 : i32
    return %arg0, %c0_i32, %c0_i32_0 : i32, i32, i32
  }
  func.func @transform_1(%arg0: i32, %arg1: i32) -> (i32, i32) {
    %c0_i32 = arith.constant 0 : i32
    %c0_i32_0 = arith.constant 0 : i32
    %c0_i32_1 = arith.constant 0 : i32
    return %c0_i32, %c0_i32_0 : i32, i32
  }
  func.func @transform_2(%arg0: i32, %arg1: i32) -> (i32, i32) {
    %c0_i32 = arith.constant 0 : i32
    %c0_i32_0 = arith.constant 0 : i32
    %c0_i32_1 = arith.constant 0 : i32
    return %c0_i32, %c0_i32_0 : i32, i32
  }
  func.func @transform_3(%arg0: i32, %arg1: i32) -> (i32, i32) {
    %c0_i32 = arith.constant 0 : i32
    %c0_i32_0 = arith.constant 0 : i32
    %c0_i32_1 = arith.constant 0 : i32
    return %c0_i32, %c0_i32_0 : i32, i32
  }
  func.func @transform_4(%arg0: i32, %arg1: i32) -> (i32, i32) {
    %c0_i32 = arith.constant 0 : i32
    %c0_i32_0 = arith.constant 0 : i32
    %c0_i32_1 = arith.constant 0 : i32
    return %c0_i32, %c0_i32_0 : i32, i32
  }
  func.func @transform_5(%arg0: i32, %arg1: i32) -> (i32, i32) {
    %c0_i32 = arith.constant 0 : i32
    %c0_i32_0 = arith.constant 0 : i32
    %c0_i32_1 = arith.constant 0 : i32
    return %c0_i32, %c0_i32_0 : i32, i32
  }
  func.func @transform_6(%arg0: i32, %arg1: i32) -> (i32, i32) {
    %c0_i32 = arith.constant 0 : i32
    %c0_i32_0 = arith.constant 0 : i32
    %c0_i32_1 = arith.constant 0 : i32
    return %c0_i32, %c0_i32_0 : i32, i32
  }
  func.func @transform_7(%arg0: i32, %arg1: i32) -> (i32, i32) {
    %c0_i32 = arith.constant 0 : i32
    %c0_i32_0 = arith.constant 0 : i32
    %c0_i32_1 = arith.constant 0 : i32
    return %c0_i32, %c0_i32_0 : i32, i32
  }
  func.func @transform_8(%arg0: i32, %arg1: i32) -> (i32, i32) {
    %c0_i32 = arith.constant 0 : i32
    %c0_i32_0 = arith.constant 0 : i32
    %c0_i32_1 = arith.constant 0 : i32
    return %c0_i32, %c0_i32_0 : i32, i32
  }
  func.func @transform_9(%arg0: i32, %arg1: i32) -> (i32, i32) {
    %c0_i32 = arith.constant 0 : i32
    %c0_i32_0 = arith.constant 0 : i32
    %c0_i32_1 = arith.constant 0 : i32
    return %c0_i32, %c0_i32_0 : i32, i32
  }
  func.func @transform_10(%arg0: i32, %arg1: i32) -> (i32, i32) {
    %c0_i32 = arith.constant 0 : i32
    %c0_i32_0 = arith.constant 0 : i32
    %c0_i32_1 = arith.constant 0 : i32
    return %c0_i32, %c0_i32_0 : i32, i32
  }
  func.func @transform_11(%arg0: i32, %arg1: i32) -> (i32, i32) {
    %c0_i32 = arith.constant 0 : i32
    %c0_i32_0 = arith.constant 0 : i32
    %c0_i32_1 = arith.constant 0 : i32
    return %c0_i32, %c0_i32_0 : i32, i32
  }
  func.func @transform_12(%arg0: i32, %arg1: i32) -> (i32, i32) {
    %c0_i32 = arith.constant 0 : i32
    %c0_i32_0 = arith.constant 0 : i32
    %c0_i32_1 = arith.constant 0 : i32
    return %c0_i32, %c0_i32_0 : i32, i32
  }
  func.func @transform_13(%arg0: i32, %arg1: i32) -> (i32, i32) {
    %c0_i32 = arith.constant 0 : i32
    %c0_i32_0 = arith.constant 0 : i32
    %c0_i32_1 = arith.constant 0 : i32
    return %c0_i32, %c0_i32_0 : i32, i32
  }
  func.func @transform_14(%arg0: i32, %arg1: i32) -> (i32, i32) {
    %c0_i32 = arith.constant 0 : i32
    %c0_i32_0 = arith.constant 0 : i32
    %c0_i32_1 = arith.constant 0 : i32
    return %c0_i32, %c0_i32_0 : i32, i32
  }
  func.func @transform_15(%arg0: i32, %arg1: i32) -> (i32, i32, i32) {
    %c0_i32 = arith.constant 0 : i32
    %c0_i32_0 = arith.constant 0 : i32
    return %arg0, %arg1, %c0_i32 : i32, i32, i32
  }
}

</mosaic_0001>

<bundles_post_ra>
// kernel: tpu_custom_call.1
= control target key start
LH: loop header
LB: loop body
LE: loop exit
PB: predicated region body
PF: predicated region fallthrough
CT: control target
= control target key end

     0   :  { %s2734_s0 = inlined_call_operand.hbm [shape: f32[2,8,32], index: 0, kind: input, shape index: {}]   ;;  %s2735_s1 = inlined_call_operand.vmem [shape: f32[32,32], index: 1, kind: input, shape index: {}]   ;;  %s2736_s2 = inlined_call_operand.vmem [shape: f32[1,32], index: 2, kind: input, shape index: {}]   ;;  %s2737_s3 = inlined_call_operand.vmem [shape: f32[32,64], index: 3, kind: input, shape index: {}]   ;;  %s2738_s4 = inlined_call_operand.vmem [shape: f32[1,64], index: 4, kind: input, shape index: {}]   ;;  %s2739_s5 = inlined_call_operand.vmem [shape: f32[32,32], index: 5, kind: input, shape index: {}]   ;;  %s2740_s6 = inlined_call_operand.vmem [shape: f32[1,32], index: 6, kind: input, shape index: {}]   ;;  %s2741_s7 = inlined_call_operand.vmem [shape: f32[1,32], index: 7, kind: input, shape index: {}]   ;;  %s2742_s8 = inlined_call_operand.vmem [shape: f32[1,32], index: 8, kind: input, shape index: {}]   ;;  %s2743_s9 = inlined_call_operand.hbm [shape: f32[32,64], index: 9, kind: input, shape index: {}]   ;;  %s2744_s10 = inlined_call_operand.vmem [shape: f32[1,64], index: 10, kind: input, shape index: {}]   ;;  %s2745_s11 = inlined_call_operand.vmem [shape: f32[64,32], index: 11, kind: input, shape index: {}]   ;;  %s2746_s12 = inlined_call_operand.vmem [shape: f32[1,32], index: 12, kind: input, shape index: {}]   ;;  %s2747_s13 = inlined_call_operand.vmem [shape: f32[1,32], index: 13, kind: input, shape index: {}]   ;;  %s2748_s14 = inlined_call_operand.vmem [shape: f32[1,32], index: 14, kind: input, shape index: {}]   ;;  %s2749_s15 = inlined_call_operand.hbm [shape: f32[2,8,32], index: 15, kind: output, shape index: {}]  }
   0x1   :  { %2756 = sst [smem:[#allocation18_spill]] %s2742_s8 }
   0x2   :  { %2757 = sst [smem:[#allocation19_spill]] %s2743_s9 }
   0x3   :  { %2758 = sst [smem:[#allocation20_spill]] %s2744_s10 }
   0x4   :  { %2759 = sst [smem:[#allocation21_spill]] %s2746_s12 }
   0x5   :  { %2760 = sst [smem:[#allocation22_spill]] %s2747_s13 }
   0x6   :  { %2761 = sst [smem:[#allocation23_spill]] %s2748_s14 }
   0x7   :  { %2762 = sst [smem:[#allocation24_spill]] %s2749_s15 }
   0x8   :  { %20 = vsyncpa [#allocation5], 0 }
   0x9   :  { %22 = vsyncpa [#allocation5 + $0x1], 0 }
   0xa   :  { %23 = vsyncpa [#allocation8], 0 }
   0xb   :  { %24 = vsyncpa [#allocation6], 0 }
   0xc   :  { %26 = vsyncpa [#allocation6 + $0x1], 0  ;;  %s2371_s18 = smov 0   ;;  %s2373_s19 = smov 0  }
   0xd   :  { %s2375_s20 = smov 0   ;;  %s2377_s21 = smov 0  }
   0xe   :  { %s2379_s22 = smov 0   ;;  %s2381_s23 = smov 0  }
   0xf LB: > { %2763 = sst [smem:[#allocation13_spill]] %s2252_s18  ;;  %s1838_s24 = sadd.s32 4294967295, %s2272_s23   ;;  %s2272_s23 = sphi %s2381_s23, %s32_s23   ;;  %s2268_s22 = sphi %s2379_s22, %s2792_s22   ;;  %s2264_s21 = sphi %s2377_s21, %s2791_s21   ;;  %s2260_s20 = sphi %s2375_s20, %s2795_s20   ;;  %s2256_s19 = sphi %s2373_s19, %s2794_s19   ;;  %s2252_s18 = sphi %s2371_s18, %s2793_s18  }
  0x10   : > { %2764 = sst [smem:[#allocation14_spill]] %s2264_s21  ;;  %s1839_s25 = sadd.s32 4294967294, %s2272_s23  }
  0x11   : > { %2765 = sst [smem:[#allocation15_spill]] %s2268_s22  ;;  %p64_p0 = scmp.ne.s32.totalorder %s2256_s19, %s2252_s18 }
  0x12   : > { %p2405_p1 = scmp.eq.s32.totalorder %s1838_s24, 0  ;;  %p2409_p2 = scmp.eq.s32.totalorder %s1838_s24, 1 }
  0x13   : > { %p390_p3 = scmp.eq.s32.totalorder %s1839_s25, 1  ;;  %p1840_p5 = scmp.ge.s32.totalorder %s2272_s23, 1 }
  0x14   : > { %p2415_p4 = por %p2405_p1, %p64_p0  ;;  %p397_p7 = scmp.lt.s32.totalorder %s2272_s23, 3 }
  0x15   : > { %p2420_p6 = por %p390_p3, %p64_p0  ;;  %s2274_s16 = smov [#allocation7]  }
  0x16   : > { %s2768_s28 = scalar_select %p2415_p4, 1, 0 }
  0x17   : > { %s2769_s29 = scalar_select %p2420_p6, 1, 0 }
  0x18   : > { %p2425_p8 = pnand %p1840_p5, %p397_p7  ;;  %s433_s17 = sshll.u32 %s2274_s16, 4  ;;  %s434_s17 = int_to_ptr.vmem [resolvable:$true] %s433_s17 }
  0x19   : > { %2770 = sst [smem:[#allocation16_spill]] %s2769_s29  ;;  %s44_s25 = sadd.s32 1, %s2268_s22 }
  0x1a   : > { %p2035_p9 = pneg %p2425_p8  ;;  %s2145_s29 = scalar_lea.vmem %s434_s17, 512 }
  0x1b   : > { %p2146_p13 = scmp.ne.s32.totalorder %s434_s17, %s2145_s29  ;;  %p2153_p5 = scmp.lt.s32.totalorder %s434_s17, %s434_s17 }
  0x1c   : > { %p2434_p11 = pnand %p2035_p9, %p2405_p1  ;;  %p2154_p7 = scmp.lt.s32.totalorder %s2145_s29, %s2145_s29 }
  0x1e   : > { %p2136_p12 = pneg %p2434_p11  ;;  %p2155_p6 = por %p2154_p7, %p2153_p5 }
  0x20   : > { %p2148_p0 = pnand %p2146_p13, %p2136_p12 }
  0x22   : > { %p2149_p3 = pneg %p2148_p0 }
  0x24   : > { %p2156_p4 = pnand %p2155_p6, %p2149_p3 }
  0x26   : > { %2159 = shalt.err (!%p2156_p4)
}
  0x27   : > { %s2275_s16 = smov 128   ;;  %s2276_s18 = smov 8  }
  0x28   : > { %s2773_s9 = sld [smem:[#allocation19_spill]]  ;;  %p46_p6 = scmp.ge.s32.totalorder %s44_s25, 2 }
  0x29   : > { %s51_s29 = sadd.s32 1, %s2260_s20  ;;  %p58_p4 = scmp.ne.s32.totalorder %s2260_s20, %s2256_s19 }
  0x2a   : > { %p59_p9 = scmp.eq.s32.totalorder %s2272_s23, 0  ;;  %s2797_s25 = smov (%p46_p6, %s44_s25), 0 }
  0x2b   : > { %2774 = sst [smem:[#allocation17_spill]] %s2797_s25  ;;  %p2458_p13 = por %p2409_p2, %p58_p4 }
  0x2c   : > { %p2452_p12 = por %p59_p9, %p58_p4  ;;  %s48_s24 = ssub.s32 %s2268_s22, %s2797_s25 }
  0x2d   : > { %p2048_p0 = scmp.lt.s32.totalorder %s2272_s23, 2  ;;  %s462_s14 = sand.u32 1, %s2260_s20  }
  0x2e   : > { %2038 = dma.hbm_to_vmem [thread:$0]  (!%p2434_p11), %s2773_s9, 512, %s434_s17, [#allocation8], %s2275_s16, %s2275_s16, %s2276_s18  }
  0x2f   : > { %p49_p11 = scmp.eq.s32.totalorder %s48_s24, 0  ;;  %s1843_s15 = sshll.u32 %s462_s14, 3 }
  0x30   : > { %s1844_s17 = sshll.u32 %s2268_s22, 7  ;;  %s466_s10 = scalar_lea.vmem [#allocation4], %s1843_s15 }
  0x31   : > { %s2467_s18 = scalar_select %p49_p11, %s2260_s20, %s51_s29  }
  0x32   : > { %s471_s12 = scalar_lea.hbm %s2734_s0, %s1844_s17  ;;  %s473_s8 = sshll.u32 %s466_s10, 4  ;;  %s474_s8 = int_to_ptr.vmem [resolvable:$true] %s473_s8 }
  0x33   : > { %p2475_p2 = pnand %p2048_p0, %p2452_p12  ;;  %s463_s25 = scalar_lea.sflag [#allocation5], %s462_s14 }
  0x34   : > { %s2173_s24 = scalar_lea.vmem %s474_s8, 128  ;;  %s2277_s29 = smov [#allocation4]  }
  0x35   : > { %p2162_p3 = pneg %p2475_p2  ;;  %p2174_p5 = scmp.ne.s32.totalorder %s474_s8, %s2173_s24 }
  0x36   : > { %s2178_s22 = sshll.u32 %s2277_s29, 4  ;;  %s2179_s22 = int_to_ptr.vmem [resolvable:$false] %s2178_s22 }
  0x37   : > { %p2176_p7 = pnand %p2174_p5, %p2162_p3  ;;  %s2180_s9 = scalar_lea.vmem %s2179_s22, 256 }
  0x38   : > { %p2181_p4 = scmp.lt.s32.totalorder %s474_s8, %s2179_s22  ;;  %p2182_p9 = scmp.lt.s32.totalorder %s2180_s9, %s2173_s24 }
  0x39   : > { %p2177_p6 = pneg %p2176_p7 }
  0x3a   : > { %p2183_p11 = por %p2182_p9, %p2181_p4 }
  0x3c   : > { %p2184_p10 = pnand %p2183_p11, %p2177_p6 }
  0x3e   : > { %2187 = shalt.err (!%p2184_p10)
}
  0x3f   : > { %2042 = dma.hbm_to_vmem [thread:$0]  (!%p2475_p2), %s471_s12, 128, %s474_s8, %s463_s25  }
  0x40   : > { %482 = sbr.rel (%p2425_p8) target bundleno = 2460 (0x99c), region = 80  ;;  %s2486_s10 = sand.u32 (!%p2425_p8), 1, %s2256_s19  }
  0x41   : > { %s1846_s13 = sshll.u32 (!%p2425_p8), %s2486_s10, 3  ;;  %s485_s14 = scalar_lea.sflag (!%p2425_p8), [#allocation5], %s2486_s10 }
  0x42   : > { %s488_s22 = scalar_lea.vmem (!%p2425_p8), [#allocation4], %s1846_s13  ;;  %p2778_p12 = scmp.ne.s32.totalorder (!%p2425_p8), %s2768_s28, 0 }
  0x45   : > { %2239 = dma.done.wait (%p2778_p12), %s485_s14, 128  }
  0x46   : > { %2241 = vsyncadd (%p2778_p12), %s485_s14, 4294967168 }
  0x47   : > { %2243 = dma.done.wait (%p2405_p1), [#allocation8], 512  }
  0x48   : > { %2245 = vsyncadd (%p2405_p1), [#allocation8], 4294966784  ;;  %v2278_v0 = vmov 0.0   ;;  %vm2279_vm0 = vmmov 0   ;;  %v547_v1 = vld [vmem:[%s2737_s3 + $0x18] sm:$0xff]  ;;  %v546_v2 = vld [vmem:[%s2737_s3 + $0x10] sm:$0xff] }
  0x49   : > { %1924 = vmatprep.subr.mxu1 %v2278_v0  ;;  %1932 = vmatprep.mubr.msk.f32.mxu1 %vm2279_vm0, %v2278_v0  ;;  %v545_v3 = vld [vmem:[%s2737_s3 + $0x8] sm:$0xff]  ;;  %v544_v4 = vld [vmem:[%s2737_s3] sm:$0xff]  ;;  %v2520_v5 = vld [vmem:[%s488_s22] sm:$0xff]  ;;  %vm555_vm1 = vcmask 261120   ;;  %vm629_vm2 = vcmask 523264   ;;  %vm721_vm3 = vcmask 64512  }
  0x4a   : > { %1946 = vmatprep.subr.mxu0 %v2278_v0  ;;  %1948 = vmatprep.mubr.msk.f32.mxu0 %vm2279_vm0, %v2278_v0  ;;  %v637_v6 = vld [vmem:[%s2735_s1 + $0x18] sm:$0xff]  ;;  %v636_v7 = vld [vmem:[%s2735_s1 + $0x10] sm:$0xff]  ;;  %v635_v8 = vld [vmem:[%s2735_s1 + $0x8] sm:$0xff]  ;;  %s2280_s25 = smov 112   ;;  %s2281_s15 = smov 120   ;;  %vm1061_vm4 = vcmask 130112  }
  0x4b   : > { %1925 = vmatpush3.msra.mxu1 %v547_v1  ;;  %v634_v9 = vld [vmem:[%s2735_s1] sm:$0xff]  ;;  %s2282_s17 = smov 104   ;;  %s2283_s16 = smov 96   ;;  %vm1235_vm5 = vcmask 195712   ;;  %vm1409_vm6 = vcmask 261312  }
  0x4c   : > { %1926 = vmatprep.subr.mxu1 %v2278_v0  ;;  %v1849_v10 = vld [vmem:[%s2738_s4] ss:$0 sm:$0xff]  ;;  %s2284_s27 = smov 80   ;;  %s2285_s24 = smov 72  }
  0x4d   : > { %1927 = vmatpush3.msra.mxu1 %v546_v2  ;;  %v1851_v14 = vld [vmem:[%s2736_s2] ss:$0 sm:$0xff]  ;;  %s2286_s29 = smov 88   ;;  %s2780_s30 = sld [smem:[#allocation20_spill]] }
  0x4e   : > { %1928 = vmatprep.subr.mxu1 %v2278_v0  ;;  %s2784_s14 = sld [smem:[#allocation23_spill]]  ;;  %s538_s8 = scalar_lea.vmem [#allocation9], %s1846_s13 }
  0x4f   : > { %1929 = vmatpush3.msra.mxu1 %v545_v3  ;;  %s1747_s12 = sshll.u32 %s538_s8, 4  ;;  %s2785_s26 = sld [smem:[#allocation24_spill]]  ;;  %s1748_s12 = int_to_ptr.vmem [resolvable:$true] %s1747_s12 }
  0x50   : > { %1930 = vmatprep.subr.mxu1 %v2278_v0 }
  0x51   : > { %1931 = vmatpush3.msra.mxu1 %v544_v4 }
  0x52   : > { %1933 = vmatmul.mubr.msk.f32.vlgmr.msra.gmra.mxu1 %vm555_vm1, %v2520_v5  ;;  %1935 = vmatprep.subr.mxu1 %v2278_v0 }
  0x53   : > { %1936 = vmatpush3.msra.mxu1 %v637_v6  ;;  %1943 = vmatprep.mubr.msk.f32.mxu1 %vm2279_vm0, %v2278_v0 }
  0x54   : > { %1937 = vmatprep.subr.mxu1 %v2278_v0 }
  0x55   : > { %1938 = vmatpush3.msra.mxu1 %v636_v7 }
  0x56   : > { %1939 = vmatprep.subr.mxu1 %v2278_v0 }
  0x57   : > { %1940 = vmatpush3.msra.mxu1 %v635_v8 }
  0x58   : > { %1941 = vmatprep.subr.mxu1 %v2278_v0 }
  0x59   : > { %1942 = vmatpush3.msra.mxu1 %v634_v9 }
  0x5a   : > { %1944 = vmatmul.mubr.msk.f32.vlgmr.msra.gmra.mxu1 %vm555_vm1, %v2520_v5  ;;  %1951 = vmatprep.subr.mxu1 %v2278_v0 }
  0x5b   : > { %1953 = vmatprep.mubr.msk.f32.mxu1 %vm2279_vm0, %v2278_v0 }
 0x112   : > { %v625_v11 = vpop.f32.mrf.mxu1 }
 0x113   : > { %v626_v12 = vadd.f32 %v1849_v10, %v625_v11 }
 0x114   : > { %v1934_v13 = vpop.f32.mrf.mxu1 }
 0x115   : > { %630 = vst.msk [vmem:[#allocation2] sm:$0xff] %vm629_vm2, %v626_v12 }
 0x11a   : > { %v715_v15 = vpop.f32.mrf.mxu1 }
 0x11b   : > { %v716_v16 = vadd.f32 %v1851_v14, %v715_v15 }
 0x11c   : > { %v1945_v17 = vpop.f32.mrf.mxu1  ;;  %v2555_v18 = vld [vmem:[#allocation2] sm:$0xff] }
 0x11d   : > { %v719_v19 = vmul.f32 0.35355338, %v716_v16  ;;  %1065 = vrot.lane.b32.xlu1 %v2555_v18, %s2280_s25  ;;  %891 = vrot.lane.b32.xlu0 %v2555_v18, %s2281_s15 }
 0x11e   : > { %1947 = vmatpush3.xpose.msk.msra.mxu0 %vm721_vm3, %v2555_v18 }
 0x11f   : > { %1956 = vmatprep.subr.mxu0 %v2278_v0 }
 0x121   : > { %1949 = vmatmul.mubr.msk.f32.vlgmr.msra.gmra.mxu0 %vm721_vm3, %v719_v19  ;;  %1063 = vrot.lane.b32.xlu1 %v719_v19, %s2280_s25  ;;  %s2287_s25 = smov 8  }
 0x122   : > { %889 = vrot.lane.b32.xlu0 %v719_v19, %s2281_s15  ;;  %1958 = vmatprep.mubr.msk.f32.mxu0 %vm2279_vm0, %v2278_v0  ;;  %s2288_s15 = smov 16  }
 0x125   : > { %1237 = vrot.lane.b32.xlu1 %v719_v19, %s2282_s17 }
 0x126   : > { %1239 = vrot.lane.b32.xlu0 %v2555_v18, %s2282_s17  ;;  %s2289_s17 = smov 24  }
 0x18f   : > { %v892_v20 = vpop.permute.xlu0 %891  ;;  %v1066_v21 = vpop.permute.xlu1 %1065 }
 0x190   : > { %1957 = vmatpush3.xpose.msk.msra.mxu0 %vm721_vm3, %v892_v20 }
 0x191   : > { %1966 = vmatprep.subr.mxu0 %v2278_v0 }
 0x193   : > { %v1064_v23 = vpop.permute.xlu1 %1063 }
 0x194   : > { %v890_v22 = vpop.permute.xlu0 %889 }
 0x195   : > { %1959 = vmatmul.mubr.msk.f32.vlgmr.msra.gmra.mxu0 %vm721_vm3, %v890_v22 }
 0x196   : > { %1967 = vmatpush3.xpose.msk.msra.mxu0 %vm721_vm3, %v1066_v21  ;;  %1968 = vmatprep.mubr.msk.f32.mxu0 %vm2279_vm0, %v2278_v0 }
 0x197   : > { %1976 = vmatprep.subr.mxu0 %v2278_v0  ;;  %v1238_v25 = vpop.permute.xlu1 %1237 }
 0x198   : > { %v1240_v24 = vpop.permute.xlu0 %1239 }
 0x199   : > { %1969 = vmatmul.mubr.msk.f32.vlgmr.msra.gmra.mxu0 %vm721_vm3, %v1064_v23 }
 0x19a   : > { %1977 = vmatpush3.xpose.msk.msra.mxu0 %vm721_vm3, %v1240_v24  ;;  %1978 = vmatprep.mubr.msk.f32.mxu0 %vm2279_vm0, %v2278_v0 }
 0x19b   : > { %1986 = vmatprep.subr.mxu0 %v2278_v0 }
 0x19d   : > { %1979 = vmatmul.mubr.msk.f32.vlgmr.msra.gmra.mxu0 %vm721_vm3, %v1238_v25 }
 0x19e   : > { %1994 = vmatprep.mubr.msk.f32.mxu0 %vm2279_vm0, %v2278_v0 }
 0x1e1   : > { %v794_v26 = vpop.f32.mrf.mxu0 }
 0x1e2   : > { %v798_v27 = vsel %vm721_vm3, %v794_v26, -inf }
 0x1e3   : > { %799 = vmax.xlane.f32.xlu0 %v798_v27  ;;  %v1950_v28 = vpop.f32.mrf.mxu0  ;;  %v1414_v27 = vld [vmem:[%s2739_s5 + $0x10] sm:$0xff] }
 0x1e4   : > { %v1413_v28 = vld [vmem:[%s2739_s5 + $0x8] sm:$0xff] }
 0x255   : > { %v963_v29 = vpop.f32.mrf.mxu0 }
 0x256   : > { %v967_v30 = vsel %vm721_vm3, %v963_v29, -inf }
 0x257   : > { %968 = vmax.xlane.f32.xlu1 %v967_v30  ;;  %v1960_v31 = vpop.f32.mrf.mxu0  ;;  %v1412_v30 = vld [vmem:[%s2739_s5] sm:$0xff] }
 0x259   : > { %v1137_v32 = vpop.f32.mrf.mxu0 }
 0x25a   : > { %v1141_v33 = vsel %vm721_vm3, %v1137_v32, -inf }
 0x25b   : > { %1142 = vmax.xlane.f32.xlu0 %v1141_v33  ;;  %v1970_v34 = vpop.f32.mrf.mxu0 }
 0x25d   : > { %v1311_v35 = vpop.f32.mrf.mxu0 }
 0x25e   : > { %v1315_v36 = vsel %vm721_vm3, %v1311_v35, -inf }
 0x25f   : > { %1316 = vmax.xlane.f32.xlu0 %v1315_v36  ;;  %v1980_v37 = vpop.f32.mrf.mxu0 }
 0x26c   : > { %v800_v38 = vpop.xlane.xlu0 %799 }
 0x26d   : > { %v801_v39 = vsub.f32 %v794_v26, %v800_v38  ;;  %v1415_v26 = vld [vmem:[%s2739_s5 + $0x18] sm:$0xff] }
 0x26e   : > { %1987 = vmatpush3.msra.mxu0 %v1415_v26 }
 0x26f   : > { %v802_v40 = vmul.f32 1.442695, %v801_v39  ;;  %1988 = vmatprep.subr.mxu0 %v2278_v0 }
 0x270   : > { %1989 = vmatpush3.msra.mxu0 %v1414_v27 }
 0x271   : > { %2114 = vpow2.f32 %v802_v40  ;;  %1990 = vmatprep.subr.mxu0 %v2278_v0  ;;  %v1865_v40 = vld [vmem:[%s2740_s6] ss:$0 sm:$0xff] }
 0x272   : > { %1991 = vmatpush3.msra.mxu0 %v1413_v28 }
 0x273   : > { %1992 = vmatprep.subr.mxu0 %v2278_v0 }
 0x274   : > { %1993 = vmatpush3.msra.mxu0 %v1412_v30  ;;  %v1874_v30 = vld [vmem:[%s2784_s14] ss:$0 sm:$0xff] }
 0x275   : > { %2008 = vmatprep.subr.mxu0 %v2278_v0 }
 0x27e   : > { %v2115_v41 = vpop.eup %2114 }
 0x27f   : > { %v804_v42 = vsel %vm721_vm3, %v2115_v41, 0.0 }
 0x280   : > { %805 = vadd.xlane.f32.xlu1 %v804_v42 }
 0x291   : > { %812 = vrot.lane.b32.xlu1 %v2555_v18, %s2283_s16  ;;  %s2188_s16 = scalar_lea.vmem %s1748_s12, 128 }
 0x292   : > { %p2189_p1 = scmp.ne.s32.totalorder %s1748_s12, %s2188_s16 }
 0x294   : > { %p2190_p8 = pnand %p2189_p1, %p2458_p13 }
 0x296   : > { %p2191_p10 = pneg %p2190_p8 }
 0x2e0   : > { %v969_v43 = vpop.xlane.xlu1 %968 }
 0x2e1   : > { %v970_v44 = vsub.f32 %v963_v29, %v969_v43 }
 0x2e3   : > { %v971_v45 = vmul.f32 1.442695, %v970_v44 }
 0x2e4   : > { %v1143_v46 = vpop.xlane.xlu0 %1142 }
 0x2e5   : > { %2116 = vpow2.f32 %v971_v45  ;;  %v1144_v47 = vsub.f32 %v1137_v32, %v1143_v46 }
 0x2e7   : > { %v1145_v48 = vmul.f32 1.442695, %v1144_v47 }
 0x2e8   : > { %v1317_v49 = vpop.xlane.xlu0 %1316 }
 0x2e9   : > { %2118 = vpow2.f32 %v1145_v48  ;;  %v1318_v50 = vsub.f32 %v1311_v35, %v1317_v49 }
 0x2eb   : > { %v1319_v51 = vmul.f32 1.442695, %v1318_v50 }
 0x2ed   : > { %2120 = vpow2.f32 %v1319_v51  ;;  %v1530_v51 = vld [vmem:[#allocation7 + $0x18] sm:$0xff] }
 0x2f2   : > { %v2117_v52 = vpop.eup %2116 }
 0x2f3   : > { %v973_v53 = vsel %vm721_vm3, %v2117_v52, 0.0 }
 0x2f4   : > { %974 = vadd.xlane.f32.xlu0 %v973_v53  ;;  %v1528_v53 = vld [vmem:[#allocation7 + $0x8] sm:$0xff] }
 0x2f6   : > { %v2119_v54 = vpop.eup %2118 }
 0x2f7   : > { %v1147_v55 = vsel %vm721_vm3, %v2119_v54, 0.0 }
 0x2f8   : > { %1148 = vadd.xlane.f32.xlu1 %v1147_v55  ;;  %v1618_v55 = vld [vmem:[%s2745_s11 + $0x30] sm:$0xff] }
 0x2fa   : > { %v2121_v56 = vpop.eup %2120 }
 0x2fb   : > { %v1321_v57 = vsel %vm721_vm3, %v2121_v56, 0.0 }
 0x2fc   : > { %1322 = vadd.xlane.f32.xlu0 %v1321_v57  ;;  %v1616_v57 = vld [vmem:[%s2745_s11 + $0x20] sm:$0xff] }
 0x309   : > { %v806_v58 = vpop.xlane.xlu1 %805  ;;  %1155 = vrot.lane.b32.xlu1 %v2555_v18, %s2284_s27  ;;  %s2779_s27 = sld [smem:[#allocation18_spill]] }
 0x30a   : > { %2122 = vrcp.f32 %v806_v58 }
 0x30d   : > { %v813_v59 = vpop.permute.xlu1 %812  ;;  %1329 = vrot.lane.b32.xlu1 %v2555_v18, %s2285_s24  ;;  %s2783_s24 = sld [smem:[#allocation22_spill]] }
 0x30e   : > { %1952 = vmatpush3.msra.mxu1 %v813_v59 }
 0x30f   : > { %1961 = vmatprep.subr.mxu1 %v2278_v0 }
 0x312   : > { %981 = vrot.lane.b32.xlu0 %v2555_v18, %s2286_s29 }
 0x313   : > { %v1873_v28 = vld [vmem:[%s2783_s24] ss:$0 sm:$0xff] }
 0x317   : > { %v2123_v60 = vpop.eup %2122 }
 0x318   : > { %v808_v61 = vmul.f32 %v2123_v60, %v806_v58  ;;  %v1615_v58 = vld [vmem:[%s2745_s11 + $0x18] sm:$0xff] }
 0x31a   : > { %v809_v62 = vsub.f32 2.0, %v808_v61 }
 0x31c   : > { %v810_v63 = vmul.f32 %v2123_v60, %v809_v62 }
 0x31e   : > { %v811_v1 = vmul.f32 %v2115_v41, %v810_v63  ;;  %v1867_v63 = vld [vmem:[%s2741_s7] ss:$0 sm:$0xff] }
 0x320   : > { %1954 = vmatmul.mubr.msk.f32.vlgmr.msra.gmra.mxu1 %vm721_vm3, %v811_v1 }
 0x321   : > { %1963 = vmatprep.mubr.msk.f32.mxu1 %vm2279_vm0, %v2278_v0 }
 0x37d   : > { %v975_v2 = vpop.xlane.xlu0 %974 }
 0x37e   : > { %2124 = vrcp.f32 %v975_v2 }
 0x381   : > { %v1149_v3 = vpop.xlane.xlu1 %1148 }
 0x382   : > { %2126 = vrcp.f32 %v1149_v3 }
 0x385   : > { %v1323_v4 = vpop.xlane.xlu0 %1322  ;;  %v1156_v15 = vpop.permute.xlu1 %1155 }
 0x386   : > { %2128 = vrcp.f32 %v1323_v4 }
 0x389   : > { %v982_v6 = vpop.permute.xlu0 %981  ;;  %v1330_v22 = vpop.permute.xlu1 %1329 }
 0x38a   : > { %1962 = vmatpush3.msra.mxu1 %v982_v6  ;;  %v1614_v6 = vld [vmem:[%s2745_s11 + $0x10] sm:$0xff] }
 0x38b   : > { %v2125_v7 = vpop.eup %2124  ;;  %1971 = vmatprep.subr.mxu1 %v2278_v0 }
 0x38c   : > { %v977_v8 = vmul.f32 %v2125_v7, %v975_v2  ;;  %v1868_v2 = vld [vmem:[%s2779_s27] ss:$0 sm:$0xff]  ;;  %s2290_s27 = smov [#allocation9]  }
 0x38e   : > { %v978_v9 = vsub.f32 2.0, %v977_v8  ;;  %v1612_v8 = vld [vmem:[%s2745_s11] sm:$0xff] }
 0x38f   : > { %v2127_v10 = vpop.eup %2126 }
 0x390   : > { %v979_v11 = vmul.f32 %v2125_v7, %v978_v9  ;;  %v1151_v12 = vmul.f32 %v2127_v10, %v1149_v3  ;;  %v1613_v7 = vld [vmem:[%s2745_s11 + $0x8] sm:$0xff]  ;;  %v1869_v9 = vld [vmem:[%s2780_s30] ss:$0 sm:$0xff] }
 0x392   : > { %v980_v13 = vmul.f32 %v2117_v52, %v979_v11  ;;  %v1152_v14 = vsub.f32 2.0, %v1151_v12  ;;  %v1529_v52 = vld [vmem:[#allocation7 + $0x10] sm:$0xff] }
 0x393   : > { %v2129_v16 = vpop.eup %2128 }
 0x394   : > { %v1153_v17 = vmul.f32 %v2127_v10, %v1152_v14  ;;  %v1325_v18 = vmul.f32 %v2129_v16, %v1323_v4  ;;  %1964 = vmatmul.mubr.msk.f32.vlgmr.msra.gmra.mxu1 %vm721_vm3, %v980_v13 }
 0x395   : > { %1972 = vmatpush3.msra.mxu1 %v1156_v15  ;;  %1973 = vmatprep.mubr.msk.f32.mxu1 %vm2279_vm0, %v2278_v0 }
 0x396   : > { %v1154_v19 = vmul.f32 %v2119_v54, %v1153_v17  ;;  %v1326_v20 = vsub.f32 2.0, %v1325_v18  ;;  %1981 = vmatprep.subr.mxu1 %v2278_v0  ;;  %v1619_v54 = vld [vmem:[%s2745_s11 + $0x38] sm:$0xff] }
 0x398   : > { %v1327_v21 = vmul.f32 %v2129_v16, %v1326_v20  ;;  %1974 = vmatmul.mubr.msk.f32.vlgmr.msra.gmra.mxu1 %vm721_vm3, %v1154_v19 }
 0x399   : > { %1982 = vmatpush3.msra.mxu1 %v1330_v22  ;;  %1983 = vmatprep.mubr.msk.f32.mxu1 %vm2279_vm0, %v2278_v0 }
 0x39a   : > { %v1328_v23 = vmul.f32 %v2121_v56, %v1327_v21  ;;  %1997 = vmatprep.subr.mxu1 %v2278_v0  ;;  %v1617_v56 = vld [vmem:[%s2745_s11 + $0x28] sm:$0xff] }
 0x39c   : > { %1984 = vmatmul.mubr.msk.f32.vlgmr.msra.gmra.mxu1 %vm721_vm3, %v1328_v23 }
 0x39d   : > { %2005 = vmatprep.mubr.msk.f32.mxu1 %vm2279_vm0, %v2278_v0  ;;  %1998 = vmatpush3.msra.mxu1 %v1530_v51 }
 0x39e   : > { %1999 = vmatprep.subr.mxu1 %v2278_v0 }
 0x39f   : > { %2000 = vmatpush3.msra.mxu1 %v1529_v52 }
 0x3a0   : > { %2001 = vmatprep.subr.mxu1 %v2278_v0 }
 0x3a1   : > { %2002 = vmatpush3.msra.mxu1 %v1528_v53 }
 0x3a2   : > { %2003 = vmatprep.subr.mxu1 %v2278_v0 }
 0x3e0   : > { %v884_v24 = vpop.f32.mrf.mxu1 }
 0x3e1   : > { %888 = vst.msk [vmem:[#allocation3] sm:$0xff] %vm721_vm3, %v884_v24 }
 0x3e2   : > { %v1955_v25 = vpop.f32.mrf.mxu1 }
 0x454   : > { %v1053_v29 = vpop.f32.mrf.mxu1 }
 0x455   : > { %1058 = vrot.lane.b32.xlu0 %v1053_v29, %s2287_s25 }
 0x456   : > { %v1965_v31 = vpop.f32.mrf.mxu1 }
 0x458   : > { %v1227_v32 = vpop.f32.mrf.mxu1 }
 0x459   : > { %1232 = vrot.lane.b32.xlu1 %v1227_v32, %s2288_s15  ;;  %s2781_s15 = sld [smem:[#allocation21_spill]] }
 0x45a   : > { %v1975_v33 = vpop.f32.mrf.mxu1 }
 0x45c   : > { %v1401_v34 = vpop.f32.mrf.mxu1 }
 0x45d   : > { %1406 = vrot.lane.b32.xlu0 %v1401_v34, %s2289_s17  ;;  %s2782_s17 = sld [smem:[#allocation14_spill]] }
 0x45e   : > { %v1985_v35 = vpop.f32.mrf.mxu1 }
 0x45f   : > { %v1871_v14 = vld [vmem:[%s2781_s15] ss:$0 sm:$0xff]  ;;  %s1733_s15 = scalar_lea.sflag [#allocation6], %s2486_s10 }
 0x463   : > { %s1876_s22 = sshll.u32 %s2782_s17, 7  ;;  %s2192_s17 = sshll.u32 %s2290_s27, 4  ;;  %s2193_s17 = int_to_ptr.vmem [resolvable:$false] %s2192_s17 }
 0x464   : > { %s1745_s25 = scalar_lea.hbm %s2785_s26, %s1876_s22  ;;  %s2194_s13 = scalar_lea.vmem %s2193_s17, 256 }
 0x465   : > { %p2195_p0 = scmp.lt.s32.totalorder %s1748_s12, %s2193_s17  ;;  %p2196_p2 = scmp.lt.s32.totalorder %s2194_s13, %s2188_s16 }
 0x467   : > { %p2197_p3 = por %p2196_p2, %p2195_p0 }
 0x469   : > { %p2198_p5 = pnand %p2197_p3, %p2191_p10 }
 0x4c7   : > { %v1059_v36 = vpop.permute.xlu0 %1058 }
 0x4c8   : > { %1062 = vst.msk [vmem:[#allocation3] sm:$0xff] %vm1061_vm4, %v1059_v36 }
 0x4cb   : > { %v1233_v37 = vpop.permute.xlu1 %1232 }
 0x4cc   : > { %1236 = vst.msk [vmem:[#allocation3] sm:$0xff] %vm1235_vm5, %v1233_v37 }
 0x4cf   : > { %v1407_v38 = vpop.permute.xlu0 %1406 }
 0x4d0   : > { %1410 = vst.msk [vmem:[#allocation3] sm:$0xff] %vm1409_vm6, %v1407_v38 }
 0x4d7   : > { %v1411_v39 = vld [vmem:[#allocation3] sm:$0xff] }
 0x4d8   : > { %1995 = vmatmul.mubr.msk.f32.vlgmr.msra.gmra.mxu0 %vm555_vm1, %v1411_v39 }
 0x4d9   : > { %2024 = vmatprep.mubr.msk.f32.mxu0 %vm2279_vm0, %v2278_v0  ;;  %2009 = vmatpush3.msra.mxu0 %v1619_v54 }
 0x4da   : > { %2010 = vmatprep.subr.mxu0 %v2278_v0 }
 0x4db   : > { %2011 = vmatpush3.msra.mxu0 %v1618_v55 }
 0x4dc   : > { %2012 = vmatprep.subr.mxu0 %v2278_v0 }
 0x4dd   : > { %2013 = vmatpush3.msra.mxu0 %v1617_v56 }
 0x4de   : > { %2014 = vmatprep.subr.mxu0 %v2278_v0 }
 0x4df   : > { %2015 = vmatpush3.msra.mxu0 %v1616_v57 }
 0x4e0   : > { %2016 = vmatprep.subr.mxu0 %v2278_v0 }
 0x4e1   : > { %2017 = vmatpush3.msra.mxu0 %v1615_v58 }
 0x4e2   : > { %2018 = vmatprep.subr.mxu0 %v2278_v0 }
 0x4e3   : > { %2019 = vmatpush3.msra.mxu0 %v1614_v6 }
 0x4e4   : > { %2020 = vmatprep.subr.mxu0 %v2278_v0 }
 0x4e5   : > { %2021 = vmatpush3.msra.mxu0 %v1613_v7 }
 0x4e6   : > { %2022 = vmatprep.subr.mxu0 %v2278_v0 }
 0x4e7   : > { %2023 = vmatpush3.msra.mxu0 %v1612_v8 }
 0x598   : > { %v1492_v41 = vpop.f32.mrf.mxu0 }
 0x599   : > { %v1493_v42 = vadd.f32 %v1865_v40, %v1492_v41 }
 0x59a   : > { %v1996_v43 = vpop.f32.mrf.mxu0 }
 0x59b   : > { %v1496_v44 = vadd.f32 %v1493_v42, %v2520_v5  ;;  %v1527_v5 = vld [vmem:[#allocation7] sm:$0xff] }
 0x59c   : > { %2004 = vmatpush3.msra.mxu1 %v1527_v5 }
 0x59d   : > { %v1499_v45 = vsel %vm555_vm1, %v1496_v44, 0.0 }
 0x59e   : > { %1500 = vadd.xlane.f32.xlu1 %v1499_v45 }
 0x627   : > { %v1501_v46 = vpop.xlane.xlu1 %1500 }
 0x628   : > { %v1503_v47 = vmul.f32 0.03125, %v1501_v46 }
 0x62a   : > { %v1504_v48 = vsub.f32 %v1496_v44, %v1503_v47 }
 0x62c   : > { %v1505_v49 = vmul.f32 %v1504_v48, %v1504_v48 }
 0x62e   : > { %v1506_v50 = vsel %vm555_vm1, %v1505_v49, 0.0 }
 0x62f   : > { %1507 = vadd.xlane.f32.xlu0 %v1506_v50 }
 0x6b8   : > { %v1508_v59 = vpop.xlane.xlu0 %1507 }
 0x6b9   : > { %v1509_v60 = vmul.f32 0.03125, %v1508_v59 }
 0x6bb   : > { %v1510_v61 = vadd.f32 1e-05, %v1509_v60 }
 0x6bd   : > { %2130 = vrsqrt.f32 %v1510_v61 }
 0x6ca   : > { %v2131_v62 = vpop.eup %2130 }
 0x6cb   : > { %v1512_v1 = vmul.f32 %v2131_v62, %v1504_v48 }
 0x6cd   : > { %v1519_v3 = vmul.f32 %v1867_v63, %v1512_v1 }
 0x6cf   : > { %v1526_v4 = vadd.f32 %v1868_v2, %v1519_v3 }
 0x6d1   : > { %2006 = vmatmul.mubr.msk.f32.vlgmr.msra.gmra.mxu1 %vm555_vm1, %v1526_v4 }
 0x791   : > { %v1607_v10 = vpop.f32.mrf.mxu1 }
 0x792   : > { %v1608_v11 = vadd.f32 %v1869_v9, %v1607_v10 }
 0x793   : > { %v2007_v12 = vpop.f32.mrf.mxu1 }
 0x794   : > { %v1611_v13 = vmax.f32 %v1608_v11, 0.0 }
 0x796   : > { %2025 = vmatmul.mubr.msk.f32.vlgmr.msra.gmra.mxu0 %vm629_vm2, %v1611_v13 }
 0x856   : > { %v1697_v15 = vpop.f32.mrf.mxu0 }
 0x857   : > { %v1698_v16 = vadd.f32 %v1871_v14, %v1697_v15 }
 0x858   : > { %v2026_v17 = vpop.f32.mrf.mxu0 }
 0x859   : > { %v1701_v18 = vadd.f32 %v1698_v16, %v1526_v4 }
 0x85b   : > { %v1704_v0 = vsel %vm555_vm1, %v1701_v18, 0.0 }
 0x85c   : > { %1705 = vadd.xlane.f32.xlu0 %v1704_v0 }
 0x8e5   : > { %v1706_v19 = vpop.xlane.xlu0 %1705 }
 0x8e6   : > { %v1707_v20 = vmul.f32 0.03125, %v1706_v19 }
 0x8e8   : > { %v1708_v21 = vsub.f32 %v1701_v18, %v1707_v20 }
 0x8ea   : > { %v1709_v22 = vmul.f32 %v1708_v21, %v1708_v21 }
 0x8ec   : > { %v1710_v23 = vsel %vm555_vm1, %v1709_v22, 0.0 }
 0x8ed   : > { %1711 = vadd.xlane.f32.xlu1 %v1710_v23 }
 0x976   : > { %v1712_v24 = vpop.xlane.xlu1 %1711 }
 0x977   : > { %v1713_v25 = vmul.f32 0.03125, %v1712_v24 }
 0x979   : > { %v1714_v26 = vadd.f32 1e-05, %v1713_v25 }
 0x97b   : > { %2132 = vrsqrt.f32 %v1714_v26 }
 0x988   : > { %v2133_v27 = vpop.eup %2132 }
 0x989   : > { %v1716_v29 = vmul.f32 %v2133_v27, %v1708_v21 }
 0x98b   : > { %v1723_v31 = vmul.f32 %v1873_v28, %v1716_v29 }
 0x98d   : > { %v1730_v32 = vadd.f32 %v1874_v30, %v1723_v31 }
 0x98f   : > { %1731 = vst.msk [vmem:[%s538_s8] sm:$0xff] %vm555_vm1, %v1730_v32 }
 0x990   : > { %2201 = shalt.err (!%p2198_p5)
}
 0x991   : > { %s2202_s24 = scalar_lea.hbm %s1745_s25, 128  ;;  %s2206_s9 = scalar_lea.hbm %s2785_s26, 256 }
 0x992   : > { %p2203_p7 = scmp.ne.s32.totalorder %s1745_s25, %s2202_s24  ;;  %p2207_p9 = scmp.lt.s32.totalorder %s1745_s25, %s2785_s26 }
 0x993   : > { %p2208_p11 = scmp.lt.s32.totalorder %s2206_s9, %s2202_s24 }
 0x994   : > { %p2204_p6 = pnand %p2203_p7, %p2458_p13 }
 0x995   : > { %p2209_p12 = por %p2208_p11, %p2207_p9 }
 0x996   : > { %p2205_p4 = pneg %p2204_p6 }
 0x998   : > { %p2210_p1 = pnand %p2209_p12, %p2205_p4 }
 0x99a   : > { %2213 = shalt.err (!%p2210_p1)
}
 0x99b   : > { %2033 = dma.vmem_to_hbm [thread:$0]  (%p2458_p13), %s1748_s12, 128, %s1745_s25, %s1733_s15  }
 0x99c PF: > { %s2786_s8 = sld [smem:[#allocation13_spill]]  ;;  %p2789_p10 = scmp.ge.s32.totalorder %s2272_s23, 2 }
 0x99d   : > { %s2787_s28 = sld [smem:[#allocation16_spill]] }
 0x9a2   : > { %s1759_s30 = sand.u32 1, %s2786_s8  }
 0x9a3   : > { %p2788_p8 = scmp.ne.s32.totalorder %s2787_s28, 0  ;;  %s1760_s16 = scalar_lea.sflag [#allocation6], %s1759_s30 }
 0x9a5   : > { %p2044_p0 = pnand %p2789_p10, %p2788_p8 }
 0x9a7   : > { %p2045_p2 = pneg %p2044_p0 }
 0x9a9   : > { %2247 = dma.done.wait (%p2045_p2), %s1760_s16, 128  }
 0x9aa   : > { %2249 = vsyncadd (%p2045_p2), %s1760_s16, 4294967168  ;;  %s32_s23 = sadd.s32 1, %s2272_s23   ;;  %s2790_s27 = smov %s2467_s18 }
 0x9ab   : > { %p29_p3 = scmp.ge.s32.totalorder %s32_s23, 4   ;;  %s2791_s21 = sld [smem:[#allocation15_spill]] }
 0x9ac   : > { %s2792_s22 = sld [smem:[#allocation17_spill]]  ;;  %s2793_s18 = smov %s2256_s19 }
 0x9ad   : > { %s2794_s19 = smov %s2260_s20  ;;  %s2795_s20 = smov %s2790_s27 }
 0x9ae   :  { %31 = sbr.rel (!%p29_p3) target bundleno = 15 (0xf), region = 134 }
 0x9b3   :  { %1765 = vsyncpa [#allocation5], 1 }
 0x9b4   :  { %1767 = vsyncpa [#allocation5 + $0x1], 1 }
 0x9b5   :  { %1768 = vsyncpa [#allocation8], 1 }
 0x9b6   :  { %1769 = vsyncpa [#allocation6], 1 }
 0x9b7   :  { %1771 = vsyncpa [#allocation6 + $0x1], 1 }

</bundles_post_ra>
